<compile_context>
chip_gen: v5e
topology: v5e:2x2
jax: 0.10.0
libtpu: 0.0.40
codegen_flags: <defaults>
</compile_context>

<pallas_src>
import math

import jax
import jax.numpy as jnp
from jax.experimental import pallas as pl
from jax.experimental.pallas import tpu as pltpu


def _vmem():
    # whole-array block resident in VMEM (shapes here are tiny)
    return pl.BlockSpec(memory_space=pltpu.MemorySpace.VMEM)


# --------------------------------------------------------------------------
# Fused CPC kernel: Linear -> normalize -> masked pos + logsumexp neg -> NCE
# --------------------------------------------------------------------------
def cpc_nce_kernel(x_ref, y_ref, w_ref, b_ref, mask_ref, nce_ref):
    x = x_ref[...]                       # (B, x_size) f32
    y = y_ref[...]                       # (B, y_size) f32

    # net(y): Linear(y_size -> x_size)  -- MXU push #1
    x_pred = jnp.dot(y, w_ref[...], preferred_element_type=jnp.float32) + b_ref[...]

    # Row L2-normalization: one reciprocal per row, then lane-wide VPU multiply
    # (avoids a full (B, F) elementwise divide).
    inv_pred = pl.reciprocal(
        jnp.sqrt(jnp.sum(x_pred * x_pred, axis=-1, keepdims=True)) + 1e-8,
        approx=False)
    x_pred_n = x_pred * inv_pred

    inv_x = pl.reciprocal(
        jnp.sqrt(jnp.sum(x * x, axis=-1, keepdims=True)) + 1e-8,
        approx=False)
    x_n = x * inv_x

    # pos_i = sum_d (mask * x_n)_{id} * x_pred_n_{id}
    pos = jnp.sum(x_n * mask_ref[...] * x_pred_n, axis=-1, keepdims=True)   # (B, 1)

    # neg_i = logsumexp_j (x_n @ x_pred_n^T)_{ij}  -- MXU push #2, contraction on
    # the feature dim of both operands (no explicit transpose needed).
    scores = jax.lax.dot_general(
        x_n, x_pred_n, (((1,), (1,)), ((), ())),
        preferred_element_type=jnp.float32)                                 # (B, B)
    m = jnp.max(scores, axis=-1, keepdims=True)
    neg = m + jnp.log(jnp.sum(jnp.exp(scores - m), axis=-1, keepdims=True))  # (B, 1)

    # nce = -(pos - neg).mean()  -> single (1, 1) writeback
    nce_ref[...] = -jnp.mean(pos - neg, keepdims=True)


def _cpc_pallas(x, y, w, b, mask):
    nce = pl.pallas_call(
        cpc_nce_kernel,
        out_shape=jax.ShapeDtypeStruct((1, 1), jnp.float32),
        in_specs=[_vmem()] * 5,
        out_specs=_vmem(),
    )(x, y, w, b, mask)
    return nce[0, 0]


# --------------------------------------------------------------------------
# Forward wrappers
# --------------------------------------------------------------------------
def cpc_forward(params, x, y, *, mask):
    """Forward with an externally supplied {0,1} mask (used for the ref check)."""
    x = jnp.atleast_2d(x)
    y = jnp.atleast_2d(y)
    return _cpc_pallas(x, y, params["w"], params["b"], mask.astype(jnp.float32))


@jax.jit
def cpc_forward_rng(params, x, y, key):
    """Full module semantics, jittable end-to-end: samples mask ~ Bernoulli(0.15)
    in-graph (replaces torch.rand(x.shape) < 0.15; same distribution, different
    RNG stream)."""
    x = jnp.atleast_2d(x)
    y = jnp.atleast_2d(y)
    mask = (jax.random.uniform(key, x.shape) < 0.15).astype(jnp.float32)
    return _cpc_pallas(x, y, params["w"], params["b"], mask)


# --------------------------------------------------------------------------
# Deterministic parameter init (PyTorch nn.Linear default: U(-k, k), k=1/sqrt(fan_in))
# Only the n_layers=1 (constructor default) path is implemented.
# TODO(synk): n_layers > 1 would be a static Python unroll of (Linear, Tanh)
# inside the same kernel; not needed for the default configuration.
# --------------------------------------------------------------------------
def init_params(key, x_size, y_size):
    k = 1.0 / math.sqrt(y_size)
    kw, kb = jax.random.split(key)
    w = jax.random.uniform(kw, (y_size, x_size), jnp.float32, -k, k)   # (in, out)
    b = jax.random.uniform(kb, (1, x_size), jnp.float32, -k, k)
    return {"w": w, "b": b}


# --------------------------------------------------------------------------
# Pure-JAX reference for correctness check (same math as the torch module)
# --------------------------------------------------------------------------
def cpc_reference(params, x, y, mask):
    x_pred = y @ params["w"] + params["b"]
    x_pred = x_pred / (jnp.linalg.norm(x_pred, axis=-1, keepdims=True) + 1e-8)
    x_n = x / (jnp.linalg.norm(x, axis=-1, keepdims=True) + 1e-8)
    pos = jnp.sum(x_n * mask * x_pred, axis=-1)
    neg = jax.scipy.special.logsumexp(x_n @ x_pred.T, axis=-1)
    return -jnp.mean(pos - neg)


if __name__ == "__main__":
    B, x_size, y_size = 8, 32, 16

    key = jax.random.PRNGKey(0)
    kx, ky, kp, km, kr = jax.random.split(key, 5)

    x = jax.random.normal(kx, (B, x_size), jnp.float32)
    y = jax.random.normal(ky, (B, y_size), jnp.float32)
    params = init_params(kp, x_size, y_size)

    # Deterministic mask so the Pallas hot path can be checked against the reference.
    mask = (jax.random.uniform(km, (B, x_size)) < 0.15).astype(jnp.float32)

    nce = cpc_forward(params, x, y, mask=mask)
    jax.block_until_ready(nce)

    ref = cpc_reference(params, x, y, mask)
    assert jnp.allclose(nce, ref, atol=1e-5, rtol=1e-5), (nce, ref)

    # End-to-end jitted path with in-graph mask sampling (module's torch.rand < 0.15).
    nce_rng = cpc_forward_rng(params, x, y, kr)
    jax.block_until_ready(nce_rng)
    assert jnp.isfinite(nce_rng)

    print("KERNEL_OK")
</pallas_src>

<mosaic_0001>
module attributes {stable_mosaic.version = 11 : i64} {
  func.func @cpc_nce_kernel(%arg0: memref<8x32xf32, #tpu.memory_space<vmem>>, %arg1: memref<8x16xf32, #tpu.memory_space<vmem>>, %arg2: memref<16x32xf32, #tpu.memory_space<vmem>>, %arg3: memref<1x32xf32, #tpu.memory_space<vmem>>, %arg4: memref<8x32xf32, #tpu.memory_space<vmem>>, %arg5: memref<1x1xf32, #tpu.memory_space<vmem>>) attributes {dimension_semantics = [], scalar_prefetch = 0 : i64, scratch_operands = 0 : i64, tpu.core_type = #tpu.core_type<tc>} {
    %c0 = arith.constant 0 : index
    %c0_0 = arith.constant 0 : index
    %0 = vector.load %arg0[%c0, %c0_0] : memref<8x32xf32, #tpu.memory_space<vmem>>, vector<8x32xf32>
    %c0_1 = arith.constant 0 : index
    %c0_2 = arith.constant 0 : index
    %1 = vector.load %arg1[%c0_1, %c0_2] : memref<8x16xf32, #tpu.memory_space<vmem>>, vector<8x16xf32>
    %c0_3 = arith.constant 0 : index
    %c0_4 = arith.constant 0 : index
    %2 = vector.load %arg2[%c0_3, %c0_4] : memref<16x32xf32, #tpu.memory_space<vmem>>, vector<16x32xf32>
    %cst = arith.constant dense<0.000000e+00> : vector<8x32xf32>
    %3 = tpu.matmul %1, %2, %cst {dimension_numbers = #tpu.dot_dimension_numbers<[1], [0], [0], [1], [0, 0, 1, 1], [], []>} : vector<8x16xf32>, vector<16x32xf32>, vector<8x32xf32> -> vector<8x32xf32>
    %c0_5 = arith.constant 0 : index
    %c0_6 = arith.constant 0 : index
    %4 = vector.load %arg3[%c0_5, %c0_6] : memref<1x32xf32, #tpu.memory_space<vmem>>, vector<1x32xf32>
    %5 = vector.broadcast %4 : vector<1x32xf32> to vector<8x32xf32>
    %6 = arith.addf %3, %5 : vector<8x32xf32>
    %7 = arith.mulf %6, %6 : vector<8x32xf32>
    %cst_7 = arith.constant dense<0.000000e+00> : vector<8xf32>
    %8 = vector.multi_reduction <add>, %7, %cst_7 [1] : vector<8x32xf32> to vector<8xf32>
    %9 = vector.shape_cast %8 : vector<8xf32> to vector<8x1xf32>
    %10 = math.sqrt %9 : vector<8x1xf32>
    %cst_8 = arith.constant 9.99999993E-9 : f32
    %11 = vector.broadcast %cst_8 : f32 to vector<8x1xf32>
    %12 = arith.addf %10, %11 : vector<8x1xf32>
    %13 = tpu.reciprocal %12 : vector<8x1xf32> -> vector<8x1xf32>
    %14 = vector.broadcast %13 : vector<8x1xf32> to vector<8x32xf32>
    %15 = arith.mulf %6, %14 : vector<8x32xf32>
    %16 = arith.mulf %0, %0 : vector<8x32xf32>
    %cst_9 = arith.constant dense<0.000000e+00> : vector<8xf32>
    %17 = vector.multi_reduction <add>, %16, %cst_9 [1] : vector<8x32xf32> to vector<8xf32>
    %18 = vector.shape_cast %17 : vector<8xf32> to vector<8x1xf32>
    %19 = math.sqrt %18 : vector<8x1xf32>
    %cst_10 = arith.constant 9.99999993E-9 : f32
    %20 = vector.broadcast %cst_10 : f32 to vector<8x1xf32>
    %21 = arith.addf %19, %20 : vector<8x1xf32>
    %22 = tpu.reciprocal %21 : vector<8x1xf32> -> vector<8x1xf32>
    %23 = vector.broadcast %22 : vector<8x1xf32> to vector<8x32xf32>
    %24 = arith.mulf %0, %23 : vector<8x32xf32>
    %c0_11 = arith.constant 0 : index
    %c0_12 = arith.constant 0 : index
    %25 = vector.load %arg4[%c0_11, %c0_12] : memref<8x32xf32, #tpu.memory_space<vmem>>, vector<8x32xf32>
    %26 = arith.mulf %24, %25 : vector<8x32xf32>
    %27 = arith.mulf %26, %15 : vector<8x32xf32>
    %cst_13 = arith.constant dense<0.000000e+00> : vector<8xf32>
    %28 = vector.multi_reduction <add>, %27, %cst_13 [1] : vector<8x32xf32> to vector<8xf32>
    %29 = vector.shape_cast %28 : vector<8xf32> to vector<8x1xf32>
    %cst_14 = arith.constant dense<0.000000e+00> : vector<8x8xf32>
    %30 = tpu.matmul %24, %15, %cst_14 {dimension_numbers = #tpu.dot_dimension_numbers<[1], [1], [0], [0], [0, 0, 1, 0], [], []>} : vector<8x32xf32>, vector<8x32xf32>, vector<8x8xf32> -> vector<8x8xf32>
    %cst_15 = arith.constant dense<0xFF800000> : vector<8xf32>
    %31 = vector.multi_reduction <maximumf>, %30, %cst_15 [1] : vector<8x8xf32> to vector<8xf32>
    %32 = vector.shape_cast %31 : vector<8xf32> to vector<8x1xf32>
    %33 = vector.broadcast %32 : vector<8x1xf32> to vector<8x8xf32>
    %34 = arith.subf %30, %33 : vector<8x8xf32>
    %35 = math.exp %34 : vector<8x8xf32>
    %cst_16 = arith.constant dense<0.000000e+00> : vector<8xf32>
    %36 = vector.multi_reduction <add>, %35, %cst_16 [1] : vector<8x8xf32> to vector<8xf32>
    %37 = vector.shape_cast %36 : vector<8xf32> to vector<8x1xf32>
    %38 = math.log %37 : vector<8x1xf32>
    %39 = arith.addf %32, %38 : vector<8x1xf32>
    %40 = arith.subf %29, %39 : vector<8x1xf32>
    %41 = vector.shape_cast %40 : vector<8x1xf32> to vector<1x8x1xf32>
    %cst_17 = arith.constant dense<0.000000e+00> : vector<1xf32>
    %42 = vector.multi_reduction <add>, %41, %cst_17 [1, 2] : vector<1x8x1xf32> to vector<1xf32>
    %43 = vector.shape_cast %42 : vector<1xf32> to vector<1x1x1xf32>
    %44 = vector.extract %43[0, 0, 0] : f32 from vector<1x1x1xf32>
    %45 = vector.broadcast %44 : f32 to vector<1x1xf32>
    %cst_18 = arith.constant 8.000000e+00 : f32
    %46 = vector.broadcast %cst_18 : f32 to vector<1x1xf32>
    %47 = arith.divf %45, %46 : vector<1x1xf32>
    %cst_19 = arith.constant 0.000000e+00 : f32
    %48 = vector.broadcast %cst_19 : f32 to vector<1x1xf32>
    %49 = arith.subf %48, %47 : vector<1x1xf32>
    %c0_20 = arith.constant 0 : index
    %c0_21 = arith.constant 0 : index
    %50 = vector.load %arg5[%c0_20, %c0_21] : memref<1x1xf32, #tpu.memory_space<vmem>>, vector<1x1xf32>
    tpu.vector_store %arg5[%c0_20, %c0_21], %49 {strides = array<i32>} : memref<1x1xf32, #tpu.memory_space<vmem>>, vector<1x1xf32>,
    return
  }
}

</mosaic_0001>

<bundles_post_ra>
// kernel: tpu_custom_call.1
= control target key start
LH: loop header
LB: loop body
LE: loop exit
PB: predicated region body
PF: predicated region fallthrough
CT: control target
= control target key end

     0   :  { %10 = vsyncpa [#allocation3], 0  ;;  %s485_s0 = inlined_call_operand.hbm [shape: f32[8,32], index: 0, kind: input, shape index: {}]   ;;  %s486_s1 = inlined_call_operand.hbm [shape: f32[8,16], index: 1, kind: input, shape index: {}]   ;;  %s487_s2 = inlined_call_operand.hbm [shape: f32[16,32], index: 2, kind: input, shape index: {}]   ;;  %s488_s3 = inlined_call_operand.vmem [shape: f32[1,32], index: 3, kind: input, shape index: {}]   ;;  %s489_s4 = inlined_call_operand.hbm [shape: f32[8,32], index: 4, kind: input, shape index: {}]   ;;  %s490_s5 = inlined_call_operand.hbm [shape: f32[1,1], index: 5, kind: output, shape index: {}]  }
   0x1   :  { %11 = vsyncpa [#allocation6], 0 }
   0x2   :  { %12 = vsyncpa [#allocation9], 0  ;;  %s30_s20 = sshll.u32 %s486_s1, 4  ;;  %s31_s20 = int_to_ptr.hbm [resolvable:$true] %s30_s20 }
   0x3   :  { %13 = vsyncpa [#allocation4], 0  ;;  %s419_s21 = smov [#allocation5]   ;;  %s19_s25 = sshll.u32 %s485_s0, 4  ;;  %s20_s25 = int_to_ptr.hbm [resolvable:$true] %s19_s25 }
   0x4   :  { %s32_s22 = sshll.u32 %s419_s21, 4  ;;  %s420_s26 = smov [#allocation2]   ;;  %s33_s22 = int_to_ptr.vmem [resolvable:$true] %s32_s22 }
   0x5   :  { %35 = dma.hbm_to_vmem [thread:$0]  %s31_s20, 128, %s33_s22, [#allocation6]  }
   0x6   :  { %s21_s27 = sshll.u32 %s420_s26, 4  ;;  %s40_s30 = sshll.u32 %s487_s2, 4  ;;  %s22_s27 = int_to_ptr.vmem [resolvable:$true] %s21_s27  ;;  %s41_s30 = int_to_ptr.hbm [resolvable:$true] %s40_s30 }
   0x7   :  { %24 = dma.hbm_to_vmem [thread:$0]  %s20_s25, 128, %s22_s27, [#allocation3]  }
   0x8   :  { %s421_s1 = smov [#allocation7]   ;;  %s56_s9 = sshll.u32 %s489_s4, 4  ;;  %s57_s9 = int_to_ptr.hbm [resolvable:$true] %s56_s9 }
   0x9   :  { %s42_s6 = sshll.u32 %s421_s1, 4  ;;  %s422_s10 = smov 128   ;;  %s43_s6 = int_to_ptr.vmem [resolvable:$true] %s42_s6 }
   0xa   :  { %s423_s0 = smov 8   ;;  %s424_s11 = smov [#allocation8]  }
   0xb   :  { %48 = dma.hbm_to_vmem [thread:$0]  %s41_s30, 256, %s43_s6, [#allocation6], %s422_s10, %s422_s10, %s423_s0  }
   0xc   :  { %s58_s12 = sshll.u32 %s424_s11, 4  ;;  %s59_s12 = int_to_ptr.vmem [resolvable:$true] %s58_s12 }
   0xd   :  { %61 = dma.hbm_to_vmem [thread:$0]  %s57_s9, 128, %s59_s12, [#allocation9]  }
   0xe   :  { %411 = dma.done.wait [#allocation3], 128  }
   0xf   :  { %412 = vsyncadd [#allocation3], 4294967168 }
  0x10   :  { %413 = dma.done.wait [#allocation6], 384  }
  0x11   :  { %414 = vsyncadd [#allocation6], 4294966912 }
  0x12   :  { %415 = dma.done.wait [#allocation9], 128  }
  0x13   :  { %416 = vsyncadd [#allocation9], 4294967168  ;;  %v81_v0 = vld [vmem:[#allocation7 + $0x8] sm:$0xff]  ;;  %v80_v1 = vld [vmem:[#allocation7] sm:$0xff]  ;;  %vm86_vm0 = vcmask 130048   ;;  %vm111_vm1 = vcmask 261120  }
  0x14   :  { %104 = vmatpush.msra.mxu0 %v81_v0  ;;  %v79_v2 = vld [vmem:[#allocation5] sm:$0xff]  ;;  %v276_v3 = vld [vmem:[%s488_s3] ss:$0 sm:$0xff]  ;;  %vm207_vm14 = vcmask 64512   ;;  %vm221_vm15 = vcmask 7168   ;;  %s426_s13 = smov [#allocation10]  }
  0x15   :  { %v472_v7 = vld [vmem:[#allocation2] sm:$0xff]  ;;  %s249_s14 = sshll.u32 %s426_s13, 4  ;;  %s251_s17 = sshll.u32 %s490_s5, 4  ;;  %s250_s14 = int_to_ptr.vmem [resolvable:$true] %s249_s14  ;;  %s252_s17 = int_to_ptr.hbm [resolvable:$true] %s251_s17 }
  0x16   :  { %105 = vmatpush.msra.mxu0 %v80_v1  ;;  %v143_v9 = vmul.f32 %v472_v7, %v472_v7  ;;  %v175_v56 = vld [vmem:[#allocation8] sm:$0xff] }
  0x17   :  { %263 = vmatmul.msk.f32.vlgmr.msra.gmra.mxu0 %vm86_vm0, %v79_v2 }
  0x18   :  { %v144_v10 = vsel %vm111_vm1, %v143_v9, 0.0 }
  0x94   :  { %v107_v4 = vpop.f32.mrf.mxu0 }
  0x95   :  { %v108_v5 = vadd.f32 %v276_v3, %v107_v4 }
  0x97   :  { %v110_v6 = vmul.f32 %v108_v5, %v108_v5 }
  0x99   :  { %v112_v8 = vsel %vm111_vm1, %v110_v6, 0.0 }
  0x9a   :  { %113 = vadd.xlane.f32.xlu0 %v112_v8 }
  0xa2   :  { %145 = vadd.xlane.f32.xlu0 %v144_v10 }
 0x10d   :  { %v114_v11 = vpop.xlane.xlu0 %113 }
 0x10e   :  { %277 = vrsqrt.f32 %v114_v11  ;;  %vm122_vm2 = vcmp.eq.f32.partialorder %v114_v11, inf  ;;  %v125_v23 = vand.u32 2147483648, %v114_v11  ;;  %vm124_vm3 = vcmp.eq.f32.partialorder %v114_v11, 0.0 }
 0x114   :  { %v278_v12 = vpop.eup %277 }
 0x115   :  { %v116_v13 = vmul.f32 %v278_v12, %v114_v11  ;;  %v146_v14 = vpop.xlane.xlu0 %145 }
 0x116   :  { %279 = vrsqrt.f32 %v146_v14  ;;  %vm154_vm4 = vcmp.eq.f32.partialorder %v146_v14, inf  ;;  %v157_v31 = vand.u32 2147483648, %v146_v14  ;;  %vm156_vm5 = vcmp.eq.f32.partialorder %v146_v14, 0.0 }
 0x117   :  { %v117_v15 = vmul.f32 %v278_v12, %v116_v13 }
 0x119   :  { %v118_v16 = vmul.f32 0.5, %v117_v15 }
 0x11b   :  { %v119_v17 = vsub.f32 1.5, %v118_v16 }
 0x11c   :  { %v280_v18 = vpop.eup %279 }
 0x11d   :  { %v120_v19 = vmul.f32 %v278_v12, %v119_v17  ;;  %v148_v20 = vmul.f32 %v280_v18, %v146_v14 }
 0x11f   :  { %v121_v21 = vmul.f32 %v120_v19, %v114_v11  ;;  %v149_v22 = vmul.f32 %v280_v18, %v148_v20 }
 0x121   :  { %v123_v24 = vsel %vm122_vm2, %v114_v11, %v121_v21  ;;  %v150_v25 = vmul.f32 0.5, %v149_v22 }
 0x122   :  { %v126_v26 = vsel %vm124_vm3, %v125_v23, %v123_v24 }
 0x123   :  { %v151_v27 = vsub.f32 1.5, %v150_v25  ;;  %v127_v28 = vadd.f32 1e-08, %v126_v26 }
 0x125   :  { %v152_v29 = vmul.f32 %v280_v18, %v151_v27  ;;  %281 = vrcp.f32 %v127_v28  ;;  %v139_v38 = vand.u32 2147483648, %v127_v28  ;;  %v137_v40 = vand.u32 2147483647, %v127_v28 }
 0x126   :  { %vm133_vm7 = vweird.f32 %v127_v28  ;;  %v425_v18 = vmov 8.0  }
 0x127   :  { %v153_v30 = vmul.f32 %v152_v29, %v146_v14  ;;  %v140_v43 = vor.u32 1.1754944e-38, %v139_v38  ;;  %vm138_vm9 = vcmp.eq.f32.partialorder %v137_v40, 8.507059e+37 }
 0x129   :  { %v155_v32 = vsel %vm154_vm4, %v146_v14, %v153_v30 }
 0x12a   :  { %v158_v33 = vsel %vm156_vm5, %v157_v31, %v155_v32 }
 0x12b   :  { %v282_v34 = vpop.eup %281  ;;  %v159_v35 = vadd.f32 1e-08, %v158_v33 }
 0x12c   :  { %v129_v36 = vmul.f32 %v282_v34, %v127_v28  ;;  %vm134_vm6 = vweird.f32 %v282_v34 }
 0x12d   :  { %283 = vrcp.f32 %v159_v35  ;;  %vm135_vm8 = vmor %vm133_vm7, %vm134_vm6  ;;  %v171_v49 = vand.u32 2147483648, %v159_v35  ;;  %v169_v51 = vand.u32 2147483647, %v159_v35  ;;  %vm165_vm11 = vweird.f32 %v159_v35 }
 0x12e   :  { %v130_v37 = vsub.f32 1.0, %v129_v36 }
 0x12f   :  { %v172_v53 = vor.u32 1.1754944e-38, %v171_v49  ;;  %vm170_vm13 = vcmp.eq.f32.partialorder %v169_v51, 8.507059e+37 }
 0x130   :  { %v131_v39 = vmul.f32 %v282_v34, %v130_v37 }
 0x132   :  { %v132_v41 = vadd.f32 %v282_v34, %v131_v39 }
 0x133   :  { %v284_v42 = vpop.eup %283 }
 0x134   :  { %v136_v44 = vsel %vm135_vm8, %v282_v34, %v132_v41  ;;  %v161_v45 = vmul.f32 %v284_v42, %v159_v35  ;;  %vm166_vm10 = vweird.f32 %v284_v42 }
 0x135   :  { %v141_v46 = vsel %vm138_vm9, %v140_v43, %v136_v44  ;;  %vm167_vm12 = vmor %vm165_vm11, %vm166_vm10 }
 0x136   :  { %v142_v47 = vmul.f32 %v141_v46, %v108_v5  ;;  %v162_v48 = vsub.f32 1.0, %v161_v45 }
 0x138   :  { %264 = vmatpush.xpose.msk.msra.mxu1 %vm111_vm1, %v142_v47  ;;  %v163_v50 = vmul.f32 %v284_v42, %v162_v48 }
 0x13a   :  { %v164_v52 = vadd.f32 %v284_v42, %v163_v50 }
 0x13c   :  { %v168_v54 = vsel %vm167_vm12, %v284_v42, %v164_v52 }
 0x13d   :  { %v173_v55 = vsel %vm170_vm13, %v172_v53, %v168_v54 }
 0x13e   :  { %v174_v57 = vmul.f32 %v173_v55, %v472_v7 }
 0x140   :  { %265 = vmatmul.msk.f32.vlgmr.msra.gmra.mxu1 %vm111_vm1, %v174_v57  ;;  %v176_v58 = vmul.f32 %v175_v56, %v174_v57 }
 0x142   :  { %v177_v59 = vmul.f32 %v176_v58, %v142_v47 }
 0x144   :  { %v178_v60 = vsel %vm111_vm1, %v177_v59, 0.0  ;;  %vm242_vm1 = vcmask 0  }
 0x145   :  { %179 = vadd.xlane.f32.xlu2 %v178_v60 }
 0x1b8   :  { %v180_v8 = vpop.xlane.xlu2 %179 }
 0x1bd   :  { %v204_v61 = vpop.f32.mrf.mxu1 }
 0x1be   :  { %v208_v62 = vsel %vm207_vm14, %v204_v61, -inf }
 0x1bf   :  { %209 = vmax.xlane.f32.xlu1 %v208_v62 }
 0x232   :  { %v210_v63 = vpop.xlane.xlu1 %209 }
 0x233   :  { %v211_v0 = vsub.f32 %v204_v61, %v210_v63 }
 0x235   :  { %v212_v1 = vmul.f32 1.442695, %v211_v0 }
 0x237   :  { %285 = vpow2.f32 %v212_v1 }
 0x23d   :  { %v286_v2 = vpop.eup %285 }
 0x23e   :  { %v214_v3 = vsel %vm207_vm14, %v286_v2, 0.0 }
 0x23f   :  { %215 = vadd.xlane.f32.xlu1 %v214_v3 }
 0x2b2   :  { %v216_v4 = vpop.xlane.xlu1 %215 }
 0x2b3   :  { %287 = vlog2.f32 %v216_v4 }
 0x2b4   :  { %289 = vrcp.f32 %v425_v18 }
 0x2b9   :  { %v288_v5 = vpop.eup %287 }
 0x2ba   :  { %v218_v6 = vmul.f32 0.6931472, %v288_v5  ;;  %v290_v19 = vpop.eup %289 }
 0x2bb   :  { %v234_v20 = vmul.f32 8.0, %v290_v19  ;;  %vm238_vm0 = vweird.f32 %v290_v19 }
 0x2bc   :  { %v219_v7 = vadd.f32 %v218_v6, %v210_v63 }
 0x2bd   :  { %v235_v21 = vsub.f32 1.0, %v234_v20 }
 0x2be   :  { %v220_v9 = vsub.f32 %v180_v8, %v219_v7 }
 0x2bf   :  { %v236_v22 = vmul.f32 %v290_v19, %v235_v21 }
 0x2c0   :  { %v222_v10 = vsel %vm221_vm15, %v220_v9, 0.0 }
 0x2c1   :  { %223 = vadd.xlane.f32.xlu2 %v222_v10  ;;  %v237_v23 = vadd.f32 %v290_v19, %v236_v22 }
 0x2c3   :  { %v239_v24 = vsel %vm238_vm0, %v290_v19, %v237_v23 }
 0x334   :  { %v224_v11 = vpop.xlane.xlu2 %223 }
 0x335   :  { %v225_v12 = vrot.slane %v224_v11, 4 }
 0x337   :  { %v226_v13 = vadd.f32 %v225_v12, %v224_v11 }
 0x339   :  { %v227_v14 = vrot.slane %v226_v13, 2 }
 0x33b   :  { %v228_v15 = vadd.f32 %v227_v14, %v226_v13 }
 0x33d   :  { %v229_v16 = vrot.slane %v228_v15, 1 }
 0x33f   :  { %v230_v17 = vadd.f32 %v229_v16, %v228_v15 }
 0x341   :  { %266 = vpush %v230_v17 }
 0x372   :  { %s267_s3 = spop %266 }
 0x373   :  { %v232_v25 = vstv %s267_s3 }
 0x374   :  { %v240_v26 = vmul.f32 %v239_v24, %v232_v25 }
 0x376   :  { %v241_v27 = vsub.f32 0.0, %v240_v26 }
 0x378   :  { %243 = vst.msk [vmem:[#allocation10] sm:$0x1] %vm242_vm1, %v241_v27 }
 0x379   :  { %254 = dma.vmem_to_hbm [thread:$0]  %s250_s14, 16, %s252_s17, [#allocation4]  }
 0x37a   :  { %417 = dma.done.wait [#allocation4], 16  }
 0x37b   :  { %418 = vsyncadd [#allocation4], 4294967280 }
 0x37c   :  { %259 = vsyncpa [#allocation3], 1 }
 0x37d   :  { %260 = vsyncpa [#allocation6], 1 }
 0x37e   :  { %261 = vsyncpa [#allocation9], 1 }
 0x37f   :  { %262 = vsyncpa [#allocation4], 1 }

</bundles_post_ra>
